<compile_context>
chip_gen: v7x
topology: tpu7x:2x2x1
jax: 0.10.0
libtpu: 0.0.40
codegen_flags: <defaults>
</compile_context>

<pallas_src>
import numpy as np
import jax
import jax.numpy as jnp
from jax.experimental import pallas as pl
from jax.experimental.pallas import tpu as pltpu


def _qnet_kernel(x_ref, w1_ref, b1_ref, w2_ref, b2_ref, out_ref):
    # hidden = relu(x @ W1 + b1); matmuls accumulate in f32, epilogue in f32.
    x = x_ref[...].astype(w1_ref.dtype)          # in-kernel cast (no HBM pass)
    h = jnp.dot(x, w1_ref[...], preferred_element_type=jnp.float32)
    h = jnp.maximum(h + b1_ref[...], 0.0)        # (TB, H) + (1, H)
    # q = hidden @ W2 + b2 ; W2 is (H, A) un-padded, output block is (TB, A).
    q = jnp.dot(h.astype(w2_ref.dtype), w2_ref[...],
                preferred_element_type=jnp.float32)
    out_ref[...] = (q + b2_ref[...]).astype(out_ref.dtype)


def prepare_qnet_params(w1, b1, w2, b2, compute_dtype=jnp.float32):
    """Done ONCE at parameter-load time (hoisted out of the forward path).

    PyTorch nn.Linear layout in:  w1 (H, S), b1 (H,), w2 (A, H), b2 (A,).
    Produces pre-transposed operands:
      w1_t (S, H), b1_r (1, H) [f32], w2_t (H, A), b2_r (1, A) [f32].
    """
    w1 = jnp.asarray(w1, jnp.float32)
    w2 = jnp.asarray(w2, jnp.float32)
    H, S = w1.shape
    A = w2.shape[0]

    w1_t = w1.T.astype(compute_dtype)                                 # (S, H)
    b1_r = jnp.asarray(b1, jnp.float32).reshape(1, H)                 # (1, H)
    w2_t = w2.T.astype(compute_dtype)                                 # (H, A)
    b2_r = jnp.asarray(b2, jnp.float32).reshape(1, A)                 # (1, A)

    return dict(w1_t=w1_t, b1_r=b1_r, w2_t=w2_t, b2_r=b2_r,
                state_dim=S, hidden_dim=H, action_dim=A,
                compute_dtype=compute_dtype)


def qnet_ops_forward(x, params, block_b=4096):
    """x: (B, state_dim) -> (B, action_dim). `params` from prepare_qnet_params."""
    S, H = params["state_dim"], params["hidden_dim"]
    A = params["action_dim"]
    w1_t, b1_r = params["w1_t"], params["b1_r"]
    w2_t, b2_r = params["w2_t"], params["b2_r"]
    B = x.shape[0]

    if B <= block_b:
        # Small-batch path: no grid (a 1-point grid only pays the pipeline
        # prologue/epilogue with nothing to overlap); whole arrays in VMEM,
        # output is exactly (B, A) -- nothing to slice afterwards.
        return pl.pallas_call(
            _qnet_kernel,
            out_shape=jax.ShapeDtypeStruct((B, A), jnp.float32),
        )(x, w1_t, b1_r, w2_t, b2_r)

    # Batch-gridded path: weights/biases stay VMEM-resident across all batch
    # tiles (constant index_maps); x/out tiles are double-buffered by Pallas.
    # Ragged last block handled by the BlockSpec boundary: rows past B are
    # never stored, so no jnp.pad and no post-kernel slice is needed.
    tb = max(8, (int(block_b) // 8) * 8)
    # Keep >= 4 grid steps for large batches so v7x's two TCs both get work
    # and each still has >= 2 steps to double-buffer.
    while tb >= 2048 and pl.cdiv(B, tb) < 4:
        tb //= 2
    tb = max(8, (tb // 8) * 8)
    nb = pl.cdiv(B, tb)

    itemsize = jnp.dtype(x.dtype).itemsize
    cost = pl.CostEstimate(
        flops=2 * B * (S * H + H * A),
        transcendentals=0,
        bytes_accessed=B * S * itemsize + B * A * 4
        + (S * H + H * A) * jnp.dtype(params["compute_dtype"]).itemsize
        + (H + A) * 4,
    )

    return pl.pallas_call(
        _qnet_kernel,
        out_shape=jax.ShapeDtypeStruct((B, A), jnp.float32),
        grid=(nb,),
        in_specs=[
            pl.BlockSpec((tb, S), lambda i: (i, 0)),     # x tile per step
            pl.BlockSpec((S, H), lambda i: (0, 0)),      # W1 resident
            pl.BlockSpec((1, H), lambda i: (0, 0)),      # b1 resident
            pl.BlockSpec((H, A), lambda i: (0, 0)),      # W2 resident
            pl.BlockSpec((1, A), lambda i: (0, 0)),      # b2 resident
        ],
        out_specs=pl.BlockSpec((tb, A), lambda i: (i, 0)),
        compiler_params=pltpu.CompilerParams(
            dimension_semantics=("parallel",)),          # 2 TCs on v7x
        cost_estimate=cost,
    )(x, w1_t, b1_r, w2_t, b2_r)


if __name__ == "__main__":
    # Deterministic parameter init mirroring QNet_ops.__init__:
    #   fc1: fanin_init uniform(+-1/sqrt(state_dim)); out: normal_(-init_w, init_w).
    state_dim, action_dim, hidden_dim, init_w = 32, 16, 128, 0.1

    key = jax.random.PRNGKey(0)
    k_w1, k_b1, k_w2, k_b2, k_x1, k_x2 = jax.random.split(key, 6)

    v1 = 1.0 / np.sqrt(state_dim)
    v2 = 1.0 / np.sqrt(hidden_dim)
    w1 = jax.random.uniform(k_w1, (hidden_dim, state_dim), jnp.float32, -v1, v1)
    b1 = jax.random.uniform(k_b1, (hidden_dim,), jnp.float32, -v1, v1)
    w2 = -init_w + init_w * jax.random.normal(k_w2, (action_dim, hidden_dim),
                                              jnp.float32)
    b2 = jax.random.uniform(k_b2, (action_dim,), jnp.float32, -v2, v2)

    # Hoisted preprocessing: done once, reused for every forward call.
    params = prepare_qnet_params(w1, b1, w2, b2, compute_dtype=jnp.float32)

    def ref_fwd(xx):
        return jnp.maximum(xx @ w1.T + b1, 0.0) @ w2.T + b2

    # 1) small-batch deployment path (no grid machinery, exact (B, A) output).
    x_small = jax.random.normal(k_x1, (8, state_dim), dtype=jnp.float32)
    out_small = jax.block_until_ready(qnet_ops_forward(x_small, params))
    assert out_small.shape == (8, action_dim)
    np.testing.assert_allclose(np.asarray(out_small),
                               np.asarray(ref_fwd(x_small)),
                               rtol=1e-5, atol=1e-5)

    # 2) batch-gridded path (tb=128 here to exercise the grid + ragged last
    #    block with no jnp.pad and no output slice; weights VMEM-resident).
    x_big = jax.random.normal(k_x2, (260, state_dim), dtype=jnp.float32)
    out_big = jax.block_until_ready(qnet_ops_forward(x_big, params, block_b=128))
    assert out_big.shape == (260, action_dim)
    np.testing.assert_allclose(np.asarray(out_big),
                               np.asarray(ref_fwd(x_big)),
                               rtol=1e-5, atol=1e-5)

    print("KERNEL_OK")
</pallas_src>

<mosaic_0001>
module attributes {stable_mosaic.version = 11 : i64} {
  func.func @_qnet_kernel(%arg0: memref<8x32xf32, #tpu.memory_space<vmem>>, %arg1: memref<32x128xf32, #tpu.memory_space<vmem>>, %arg2: memref<1x128xf32, #tpu.memory_space<vmem>>, %arg3: memref<128x16xf32, #tpu.memory_space<vmem>>, %arg4: memref<1x16xf32, #tpu.memory_space<vmem>>, %arg5: memref<8x16xf32, #tpu.memory_space<vmem>>) attributes {dimension_semantics = [], scalar_prefetch = 0 : i64, scratch_operands = 0 : i64, tpu.core_type = #tpu.core_type<tc>} {
    %c0 = arith.constant 0 : index
    %c0_0 = arith.constant 0 : index
    %0 = vector.load %arg0[%c0, %c0_0] : memref<8x32xf32, #tpu.memory_space<vmem>>, vector<8x32xf32>
    %c0_1 = arith.constant 0 : index
    %c0_2 = arith.constant 0 : index
    %1 = vector.load %arg1[%c0_1, %c0_2] : memref<32x128xf32, #tpu.memory_space<vmem>>, vector<32x128xf32>
    %cst = arith.constant dense<0.000000e+00> : vector<8x128xf32>
    %2 = tpu.matmul %0, %1, %cst {dimension_numbers = #tpu.dot_dimension_numbers<[1], [0], [0], [1], [0, 0, 1, 1], [], []>} : vector<8x32xf32>, vector<32x128xf32>, vector<8x128xf32> -> vector<8x128xf32>
    %c0_3 = arith.constant 0 : index
    %c0_4 = arith.constant 0 : index
    %3 = vector.load %arg2[%c0_3, %c0_4] : memref<1x128xf32, #tpu.memory_space<vmem>>, vector<1x128xf32>
    %4 = vector.broadcast %3 : vector<1x128xf32> to vector<8x128xf32>
    %5 = arith.addf %2, %4 : vector<8x128xf32>
    %cst_5 = arith.constant 0.000000e+00 : f32
    %6 = vector.broadcast %cst_5 : f32 to vector<8x128xf32>
    %7 = arith.maximumf %5, %6 : vector<8x128xf32>
    %c0_6 = arith.constant 0 : index
    %c0_7 = arith.constant 0 : index
    %8 = vector.load %arg3[%c0_6, %c0_7] : memref<128x16xf32, #tpu.memory_space<vmem>>, vector<128x16xf32>
    %cst_8 = arith.constant dense<0.000000e+00> : vector<8x16xf32>
    %9 = tpu.matmul %7, %8, %cst_8 {dimension_numbers = #tpu.dot_dimension_numbers<[1], [0], [0], [1], [0, 0, 1, 1], [], []>} : vector<8x128xf32>, vector<128x16xf32>, vector<8x16xf32> -> vector<8x16xf32>
    %c0_9 = arith.constant 0 : index
    %c0_10 = arith.constant 0 : index
    %10 = vector.load %arg4[%c0_9, %c0_10] : memref<1x16xf32, #tpu.memory_space<vmem>>, vector<1x16xf32>
    %11 = vector.broadcast %10 : vector<1x16xf32> to vector<8x16xf32>
    %12 = arith.addf %9, %11 : vector<8x16xf32>
    %c0_11 = arith.constant 0 : index
    %c0_12 = arith.constant 0 : index
    %13 = vector.load %arg5[%c0_11, %c0_12] : memref<8x16xf32, #tpu.memory_space<vmem>>, vector<8x16xf32>
    tpu.vector_store %arg5[%c0_11, %c0_12], %12 {strides = array<i32>} : memref<8x16xf32, #tpu.memory_space<vmem>>, vector<8x16xf32>,
    return
  }
}

</mosaic_0001>

<bundles_post_ra>
// kernel: tpu_custom_call.1
= control target key start
LH: loop header
LB: loop body
LE: loop exit
PB: predicated region body
PF: predicated region fallthrough
CT: control target
= control target key end

     0   :  { %v346_v3 = vmov 0.0|0.0   ;;  %vm347_vm0 = vmmov 0   ;;  %v348_v6 = vmov 0.0   ;;  %s461_s0 = inlined_call_operand.vmem [shape: f32[8,32], index: 0, kind: input, shape index: {}]   ;;  %s462_s1 = inlined_call_operand.vmem [shape: f32[32,128], index: 1, kind: input, shape index: {}]   ;;  %s463_s2 = inlined_call_operand.vmem [shape: f32[1,128], index: 2, kind: input, shape index: {}]   ;;  %s464_s3 = inlined_call_operand.vmem [shape: f32[128,16], index: 3, kind: input, shape index: {}]   ;;  %s465_s4 = inlined_call_operand.vmem [shape: f32[1,16], index: 4, kind: input, shape index: {}]   ;;  %s466_s5 = inlined_call_operand.hbm [shape: f32[8,16], index: 5, kind: output, shape index: {}]  }
   0x1   :  { %v22_v0 = vld [vmem:[%s462_s1] sm:$0xff]  ;;  %v23_v1 = vld [vmem:[%s462_s1 + $0x8] sm:$0xff]  ;;  %v24_v2 = vld [vmem:[%s462_s1 + $0x10] sm:$0xff]  ;;  %288 = vmatprep.subr.bf16.mxu0 %v346_v3  ;;  %250 = vmatprep.mubr.msk.f32.mxu0 %vm347_vm0, %v348_v6 }
   0x2   :  { %v289_v4 = vpack.c.bf16 %v23_v1, %v22_v0  ;;  %v25_v5 = vld [vmem:[%s462_s1 + $0x18] sm:$0xff]  ;;  %v108_v7 = vld [vmem:[%s464_s3] sm:$0xff]  ;;  %294 = vmatprep.subr.bf16.mxu1 %v346_v3  ;;  %v109_v8 = vld [vmem:[%s464_s3 + $0x8] sm:$0xff]  ;;  %285 = vmatprep.mubr.msk.f32.mxu1 %vm347_vm0, %v348_v6 }
   0x3   :  { %v110_v9 = vld [vmem:[%s464_s3 + $0x10] sm:$0xff]  ;;  %v111_v10 = vld [vmem:[%s464_s3 + $0x18] sm:$0xff]  ;;  %v292_v11 = vpack.c.bf16 %v25_v5, %v24_v2  ;;  %v295_v12 = vpack.c.bf16 %v109_v8, %v108_v7  ;;  %v112_v14 = vld [vmem:[%s464_s3 + $0x20] sm:$0xff] }
   0x4   :  { %290 = vmatpush3.bf16.msra.mxu0 %v289_v4  ;;  %v298_v13 = vpack.c.bf16 %v111_v10, %v110_v9  ;;  %v113_v15 = vld [vmem:[%s464_s3 + $0x28] sm:$0xff] }
   0x5   :  { %291 = vmatprep.subr.bf16.mxu0 %v346_v3  ;;  %296 = vmatpush3.bf16.msra.mxu1 %v295_v12 }
   0x6   :  { %297 = vmatprep.subr.bf16.mxu1 %v346_v3 }
   0x7   :  { %10 = vsyncpa [#allocation3], 0  ;;  %v21_v16 = vld [vmem:[%s461_s0] sm:$0xff]  ;;  %vm33_vm1 = vcmask 261120   ;;  %v301_v17 = vpack.c.bf16 %v113_v15, %v112_v14  ;;  %v114_v18 = vld [vmem:[%s464_s3 + $0x30] sm:$0xff]  ;;  %s349_s11 = smov [#allocation2]  }
   0x8   :  { %293 = vmatpush3.bf16.msra.mxu0 %v292_v11  ;;  %v115_v19 = vld [vmem:[%s464_s3 + $0x38] sm:$0xff]  ;;  %v116_v21 = vld [vmem:[%s464_s3 + $0x40] sm:$0xff]  ;;  %v117_v22 = vld [vmem:[%s464_s3 + $0x48] sm:$0xff]  ;;  %s209_s12 = sshll.u32 %s349_s11, 4  ;;  %vm201_vm2 = vcmask 130048   ;;  %s210_s12 = int_to_ptr.vmem [resolvable:$true] %s209_s12 }
   0x9   :  { %299 = vmatpush3.bf16.msra.mxu1 %v298_v13  ;;  %v304_v20 = vpack.c.bf16 %v115_v19, %v114_v18  ;;  %v307_v23 = vpack.c.bf16 %v117_v22, %v116_v21  ;;  %v118_v24 = vld [vmem:[%s464_s3 + $0x50] sm:$0xff]  ;;  %v119_v25 = vld [vmem:[%s464_s3 + $0x58] sm:$0xff]  ;;  %v120_v27 = vld [vmem:[%s464_s3 + $0x60] sm:$0xff]  ;;  %p327_p1 = scmp.lt.s32.totalorder %s210_s12, %s210_s12 }
   0xa   :  { %300 = vmatprep.subr.bf16.mxu1 %v346_v3  ;;  %v310_v26 = vpack.c.bf16 %v119_v25, %v118_v24  ;;  %v121_v28 = vld [vmem:[%s464_s3 + $0x68] sm:$0xff]  ;;  %v122_v30 = vld [vmem:[%s464_s3 + $0x70] sm:$0xff]  ;;  %v123_v31 = vld [vmem:[%s464_s3 + $0x78] sm:$0xff]  ;;  %s322_s3 = scalar_lea.vmem %s210_s12, 128 }
   0xb   :  { %251 = vmatmul.mubr.msk.f32.vlgmr.msra.gmra.mrb[0].mxu0 %vm33_vm1, %v21_v16  ;;  %v313_v29 = vpack.c.bf16 %v121_v28, %v120_v27  ;;  %v316_v32 = vpack.c.bf16 %v123_v31, %v122_v30  ;;  %v217_v33 = vld [vmem:[%s463_s2] ss:$0 sm:$0xff]  ;;  %p323_p0 = scmp.ne.s32.totalorder %s210_s12, %s322_s3  ;;  %p328_p2 = scmp.lt.s32.totalorder %s322_s3, %s322_s3 }
   0xc   :  { %v219_v38 = vld [vmem:[%s465_s4] ss:$0 sm:$0xff] }
   0xd   :  { %302 = vmatpush3.bf16.msra.mxu1 %v301_v17  ;;  %p329_p3 = por %p328_p2, %p327_p1 }
   0xe   :  { %303 = vmatprep.subr.bf16.mxu1 %v346_v3 }
   0xf   :  { %p330_p4 = pnand %p329_p3, %p323_p0 }
  0x11   :  { %305 = vmatpush3.bf16.msra.mxu1 %v304_v20 }
  0x12   :  { %306 = vmatprep.subr.bf16.mxu1 %v346_v3 }
  0x15   :  { %308 = vmatpush3.bf16.msra.mxu1 %v307_v23 }
  0x16   :  { %309 = vmatprep.subr.bf16.mxu1 %v346_v3 }
  0x19   :  { %311 = vmatpush3.bf16.msra.mxu1 %v310_v26 }
  0x1a   :  { %312 = vmatprep.subr.bf16.mxu1 %v346_v3 }
  0x1d   :  { %314 = vmatpush3.bf16.msra.mxu1 %v313_v29 }
  0x1e   :  { %315 = vmatprep.subr.bf16.mxu1 %v346_v3 }
  0x21   :  { %317 = vmatpush3.bf16.msra.mxu1 %v316_v32 }
  0xde   :  { %v103_v34 = vpop.f32.mrb[0].mxu0 }
  0xdf   :  { %v104_v35 = vadd.f32 %v217_v33, %v103_v34  ;;  %v252_v36 = vpop.f32.mrb[1].mxu0 }
  0xe1   :  { %v107_v37 = vmax.f32 %v104_v35, 0.0 }
  0xe3   :  { %286 = vmatmul.mubr.f32.vlgmr.msra.gmra.mrb[0].mxu1 %v107_v37 }
 0x1b6   :  { %v197_v39 = vpop.f32.mrb[0].mxu1 }
 0x1b7   :  { %v198_v40 = vadd.f32 %v219_v38, %v197_v39  ;;  %v287_v41 = vpop.f32.mrb[1].mxu1 }
 0x1b9   :  { %202 = vst.msk [vmem:[#allocation2] sm:$0xff] %vm201_vm2, %v198_v40 }
 0x1ba   :  { %333 = shalt.err (!%p330_p4)
}
 0x1bb   :  { %s334_s14 = scalar_lea.hbm %s466_s5, 128 }
 0x1bc   :  { %p335_p5 = scmp.ne.s32.totalorder %s466_s5, %s334_s14  ;;  %p338_p6 = scmp.lt.u32.totalorder %s334_s14, %s466_s5 }
 0x1be   :  { %p340_p7 = pnand %p338_p6, %p335_p5 }
 0x1c0   :  { %343 = shalt.err (!%p340_p7)
}
 0x1c1   :  { %212 = dma.vmem_to_hbm [thread:$0]  %s210_s12, 128, %s466_s5, [#allocation3]  }
 0x1c2   :  { %344 = dma.done.wait [#allocation3], 128  }
 0x1c3   :  { %345 = vsyncadd [#allocation3], 4294967168 }
 0x1c4   :  { %216 = vsyncpa [#allocation3], 1 }

</bundles_post_ra>
